<compile_context>
chip_gen: v6e
topology: v6e:2x2x1
jax: 0.10.0
libtpu: 0.0.40
codegen_flags: <defaults>
</compile_context>

<pallas_src>
import functools
import math

import jax
import jax.numpy as jnp
from jax.experimental import pallas as pl
from jax.experimental.pallas import tpu as pltpu

MIN_NORM = 1e-15
BALL_EPS = 4e-3  # PoincareBall.eps[float32]


# ---------------- Poincare-ball math (pure JAX, used for reference + bias hoist) ------

def _lnorm(x):
    return jnp.sqrt(jnp.sum(x * x, axis=-1, keepdims=True))


def _artanh(x):
    # torch Artanh clamps to (-1+1e-15, 1-1e-15); use an fp32-safe clamp.
    x = jnp.clip(x, -1.0 + 1e-7, 1.0 - 1e-7)
    return 0.5 * (jnp.log1p(x) - jnp.log1p(-x))


def _proj(x, c):
    norm = jnp.maximum(_lnorm(x), MIN_NORM)
    maxnorm = (1.0 - BALL_EPS) / math.sqrt(c)
    projected = x / norm * maxnorm
    return jnp.where(norm > maxnorm, projected, x)


def _expmap0(u, c):
    sqrt_c = math.sqrt(c)
    u_norm = jnp.maximum(_lnorm(u), MIN_NORM)
    return jnp.tanh(sqrt_c * u_norm) * u / (sqrt_c * u_norm)


def _logmap0(p, c):
    sqrt_c = math.sqrt(c)
    p_norm = jnp.maximum(_lnorm(p), MIN_NORM)
    return (1.0 / sqrt_c) * _artanh(sqrt_c * p_norm) * p / p_norm


def _mobius_add(x, y, c):
    x2 = jnp.sum(x * x, axis=-1, keepdims=True)
    y2 = jnp.sum(y * y, axis=-1, keepdims=True)
    xy = jnp.sum(x * y, axis=-1, keepdims=True)
    num = (1.0 + 2.0 * c * xy + c * y2) * x + (1.0 - c * x2) * y
    denom = 1.0 + 2.0 * c * xy + c * c * x2 * y2
    return num / jnp.maximum(denom, MIN_NORM)


def _mobius_matvec(w_t, x, c):
    sqrt_c = math.sqrt(c)
    x_norm = jnp.maximum(_lnorm(x), MIN_NORM)
    mx = jnp.dot(x, w_t, preferred_element_type=jnp.float32)
    mx_norm = jnp.maximum(_lnorm(mx), MIN_NORM)
    res_c = jnp.tanh(mx_norm / x_norm * _artanh(sqrt_c * x_norm)) * mx / (mx_norm * sqrt_c)
    all_zero = jnp.max(jnp.abs(mx), axis=-1, keepdims=True) == 0.0
    return jnp.where(all_zero, jnp.zeros_like(res_c), res_c)


def _hgc_forward_ref(x, adj, w_t, bias_row, c_in, c_out):
    """Pure-JAX reference (un-fused math) for the correctness check."""
    mv = _mobius_matvec(w_t, x, c_in)
    res = _proj(mv, c_in)
    hyp_bias = _proj(_expmap0(bias_row, c_in), c_in)
    res = _proj(_mobius_add(res, hyp_bias, c_in), c_in)
    x_tangent = _logmap0(res, c_in)
    support_t = jnp.dot(adj, x_tangent, preferred_element_type=jnp.float32)
    h = _proj(_expmap0(support_t, c_in), c_in)
    xt = jnp.maximum(_logmap0(h, c_in), 0.0)
    return _proj(_expmap0(xt, c_out), c_out)


# ---------------- fused in-kernel helpers ---------------------------------------------

def _expmap0_proj_fused(u, c):
    """expmap0 followed by proj, reusing the analytic output norm (single reduction)."""
    sqrt_c = math.sqrt(c)
    u_norm = jnp.maximum(jnp.sqrt(jnp.sum(u * u, axis=-1, keepdims=True)), MIN_NORM)
    t = jnp.tanh(sqrt_c * u_norm)
    res = t * u / (sqrt_c * u_norm)
    res_norm = jnp.maximum(t / sqrt_c, MIN_NORM)          # ||res|| analytically
    maxnorm = (1.0 - BALL_EPS) / sqrt_c
    clamp = res_norm > maxnorm
    res = jnp.where(clamp, res * (maxnorm / res_norm), res)
    res_norm = jnp.where(clamp, maxnorm, res_norm)
    return res, res_norm


# ---------------- Phase A kernel: HypLinear + logmap0 ---------------------------------

def _linear_logmap_kernel(x_ref, w_ref, hb_ref, xt_ref, *, c_in):
    c = c_in
    sqrt_c = math.sqrt(c)
    maxnorm = (1.0 - BALL_EPS) / sqrt_c

    x = x_ref[...]          # (tm, Fin_p)
    w_t = w_ref[...]        # (Fin_p, Fout_p)
    hyp_bias = hb_ref[...]  # (1, Fout_p), precomputed proj(expmap0(bias))

    # ---- mobius_matvec(W, x, c_in) ---------------------------------------------------
    x_norm = jnp.maximum(jnp.sqrt(jnp.sum(x * x, axis=-1, keepdims=True)), MIN_NORM)
    mx = jnp.dot(x, w_t, preferred_element_type=jnp.float32)
    mx_sq = jnp.sum(mx * mx, axis=-1, keepdims=True)
    mx_norm = jnp.maximum(jnp.sqrt(mx_sq), MIN_NORM)
    t = jnp.tanh(mx_norm / x_norm * _artanh(sqrt_c * x_norm))
    res = t * mx / (mx_norm * sqrt_c)
    all_zero = mx_sq == 0.0                                # (mx == 0).prod(-1) w/o extra reduction
    res = jnp.where(all_zero, 0.0, res)
    res_norm = jnp.where(all_zero, 0.0, t / sqrt_c)        # analytic ||res||, no reduction

    # ---- proj(res, c_in), reusing the analytic norm -----------------------------------
    clamp = res_norm > maxnorm
    res = jnp.where(clamp, res * (maxnorm / jnp.maximum(res_norm, MIN_NORM)), res)
    res_norm = jnp.where(clamp, maxnorm, res_norm)

    # ---- mobius_add(res, hyp_bias, c_in) -> proj ---------------------------------------
    x2 = res_norm * res_norm                               # reuse analytic norm
    y2 = jnp.sum(hyp_bias * hyp_bias, axis=-1, keepdims=True)   # (1,1), cheap
    xy = jnp.sum(res * hyp_bias, axis=-1, keepdims=True)
    gamma = 1.0 + 2.0 * c * xy
    num = (gamma + c * y2) * res + (1.0 - c * x2) * hyp_bias
    denom = gamma + c * c * x2 * y2
    h = num / jnp.maximum(denom, MIN_NORM)

    h_norm = jnp.maximum(jnp.sqrt(jnp.sum(h * h, axis=-1, keepdims=True)), MIN_NORM)
    h = jnp.where(h_norm > maxnorm, h * (maxnorm / h_norm), h)
    h_norm = jnp.minimum(h_norm, maxnorm)

    # ---- logmap0(h, c_in), reusing h_norm ----------------------------------------------
    xt = (_artanh(sqrt_c * h_norm) / (sqrt_c * h_norm)) * h
    xt_ref[...] = xt.astype(xt_ref.dtype)


# ---------------- Phase B kernel: tiled adj @ x_tangent + hyperbolic epilogue ----------

def _agg_act_kernel(adj_ref, xt_ref, out_ref, acc_ref, *, c_in, c_out):
    k = pl.program_id(1)

    @pl.when(k == 0)
    def _():
        acc_ref[...] = jnp.zeros_like(acc_ref)

    acc_ref[...] += jnp.dot(adj_ref[...], xt_ref[...],
                            preferred_element_type=jnp.float32)

    @pl.when(k == pl.num_programs(1) - 1)
    def _():
        sqrt_ci = math.sqrt(c_in)
        support_t = acc_ref[...]
        # HypAgg tail: expmap0(c_in) -> proj(c_in)
        h, h_norm = _expmap0_proj_fused(support_t, c_in)
        # HypAct: logmap0(c_in) (norm reused) -> ReLU -> proj_tan0 (id) -> expmap0/proj(c_out)
        xt = (_artanh(sqrt_ci * h_norm) / (sqrt_ci * h_norm)) * h
        xt = jnp.maximum(xt, 0.0)
        out, _ = _expmap0_proj_fused(xt, c_out)
        out_ref[...] = out.astype(out_ref.dtype)


# ---------------- wrapper ---------------------------------------------------------------

def _round_up(v, m):
    return ((v + m - 1) // m) * m


def hyperbolic_graph_conv(x, adj, weight, bias, c_in=1.0, c_out=1.0,
                          *, row_tile=512, k_tile=512):
    """x: [N, F_in], adj: [N, N] dense, weight: [F_out, F_in] (torch layout), bias: [F_out]."""
    N, f_in = x.shape
    f_out = weight.shape[0]
    c_in = float(c_in)
    c_out = float(c_out)
    f32 = jnp.float32

    # ---- padded / tiled geometry --------------------------------------------------------
    fin_p = _round_up(f_in, 128)        # lane-dense input features
    fout_p = _round_up(f_out, 128)      # lane-dense output features (unmasked vst)
    n8 = _round_up(N, 8)
    if n8 <= min(row_tile, k_tile):
        tm = tk = n_p = n8              # single full-extent tile
    else:
        tm, tk = row_tile, k_tile
        if tm % 8 != 0 or tk % 128 != 0:
            raise ValueError("row_tile must be a multiple of 8 and k_tile a multiple of 128")
        n_p = _round_up(N, math.lcm(tm, tk))

    # ---- wrapper-side zero padding (padded lanes/rows stay exactly zero throughout) ------
    xp = jnp.pad(x.astype(f32), ((0, n_p - N), (0, fin_p - f_in)))
    adjp = jnp.pad(adj.astype(f32), ((0, n_p - N), (0, n_p - N)))
    wtp = jnp.pad(weight.astype(f32).T, ((0, fin_p - f_in), (0, fout_p - f_out)))
    # Hyperbolic bias depends only on (bias, c_in): hoist it out of the per-tile kernel body.
    hyp_bias = _proj(_expmap0(bias.astype(f32).reshape(1, f_out), c_in), c_in)
    hbp = jnp.pad(hyp_bias, ((0, 0), (0, fout_p - f_out)))

    def vmem_limit(nbytes):
        # explicit scoped-VMEM request; cap at 64 MiB so a v6e-tuned config still fits v7x.
        return int(min(64 * 1024 * 1024, max(2 * nbytes, 16 * 1024 * 1024)))

    # ---- Phase A: HypLinear + logmap0  ->  x_tangent [n_p, fout_p] ------------------------
    bytes_a = 4 * (2 * tm * fin_p + 2 * fin_p * fout_p + 2 * fout_p + 2 * tm * fout_p)
    cost_a = pl.CostEstimate(
        flops=2 * n_p * fin_p * fout_p + 24 * n_p * fout_p,
        transcendentals=4 * n_p,
        bytes_accessed=4 * (n_p * fin_p + fin_p * fout_p + fout_p + n_p * fout_p),
    )
    x_tangent = pl.pallas_call(
        functools.partial(_linear_logmap_kernel, c_in=c_in),
        out_shape=jax.ShapeDtypeStruct((n_p, fout_p), f32),
        grid_spec=pltpu.PrefetchScalarGridSpec(
            num_scalar_prefetch=0,
            grid=(n_p // tm,),
            in_specs=[
                pl.BlockSpec((tm, fin_p), lambda i: (i, 0)),
                pl.BlockSpec((fin_p, fout_p), lambda i: (0, 0)),
                pl.BlockSpec((1, fout_p), lambda i: (0, 0)),
            ],
            out_specs=pl.BlockSpec((tm, fout_p), lambda i: (i, 0)),
        ),
        compiler_params=pltpu.CompilerParams(
            dimension_semantics=("parallel",),
            vmem_limit_bytes=vmem_limit(bytes_a),
        ),
        cost_estimate=cost_a,
    )(xp, wtp, hbp)

    # ---- Phase B: tiled adj @ x_tangent with f32 accumulator + hyperbolic epilogue --------
    bytes_b = 4 * (2 * tm * tk + 2 * tk * fout_p + 2 * tm * fout_p + tm * fout_p)
    cost_b = pl.CostEstimate(
        flops=2 * n_p * n_p * fout_p + 20 * n_p * fout_p,
        transcendentals=4 * n_p,
        bytes_accessed=4 * (n_p * n_p + 2 * n_p * fout_p),
    )
    out_p = pl.pallas_call(
        functools.partial(_agg_act_kernel, c_in=c_in, c_out=c_out),
        out_shape=jax.ShapeDtypeStruct((n_p, fout_p), f32),
        grid_spec=pltpu.PrefetchScalarGridSpec(
            num_scalar_prefetch=0,
            grid=(n_p // tm, n_p // tk),          # reduction (K) axis last
            in_specs=[
                pl.BlockSpec((tm, tk), lambda i, k: (i, k)),
                pl.BlockSpec((tk, fout_p), lambda i, k: (k, 0)),
            ],
            out_specs=pl.BlockSpec((tm, fout_p), lambda i, k: (i, 0)),
            scratch_shapes=[pltpu.VMEM((tm, fout_p), jnp.float32)],
        ),
        compiler_params=pltpu.CompilerParams(
            dimension_semantics=("parallel", "arbitrary"),
            vmem_limit_bytes=vmem_limit(bytes_b),
        ),
        cost_estimate=cost_b,
    )(adjp, x_tangent)

    return out_p[:N, :f_out]


# ---------------- main -------------------------------------------------------------------

if __name__ == "__main__":
    def make_inputs(key, n, f_in, f_out):
        kx, kadj, kw, kb = jax.random.split(key, 4)
        # Node features: small values so they lie well inside the Poincare ball.
        x = (0.05 * jax.random.normal(kx, (n, f_in))).astype(jnp.float32)
        # Symmetric row-normalized adjacency (dense stand-in for torch.spmm's sparse adj).
        a = (jax.random.uniform(kadj, (n, n)) > 0.5).astype(jnp.float32)
        a = jnp.minimum(a + a.T + jnp.eye(n, dtype=jnp.float32), 1.0)
        adj = a / jnp.sum(a, axis=-1, keepdims=True)
        # HypLinear params: xavier_uniform_(weight, gain=sqrt(2)); small nonzero bias to
        # exercise the mobius_add path (the module initializes it to 0 but it is learned).
        gain = math.sqrt(2.0)
        bound = gain * math.sqrt(6.0 / (f_in + f_out))
        weight = jax.random.uniform(kw, (f_out, f_in), minval=-bound, maxval=bound).astype(jnp.float32)
        bias = (0.01 * jax.random.normal(kb, (f_out,))).astype(jnp.float32)
        return x, adj, weight, bias

    C_IN, C_OUT = 1.0, 1.0
    k1, k2 = jax.random.split(jax.random.PRNGKey(0))
    ok = True

    # Case 1: small graph -> single full-extent tile.
    x, adj, w, b = make_inputs(k1, 8, 16, 32)
    out = jax.block_until_ready(hyperbolic_graph_conv(x, adj, w, b, C_IN, C_OUT))
    ref = _hgc_forward_ref(x, adj, w.T, b.reshape(1, -1), C_IN, C_OUT)
    ok &= out.shape == (8, 32)
    ok &= bool(jnp.all(jnp.isfinite(out)))
    ok &= bool(jnp.allclose(out, ref, atol=2e-5, rtol=1e-4))

    # Case 2: larger graph with 128x128 tiles -> exercises the K-accumulation + epilogue path.
    x, adj, w, b = make_inputs(k2, 256, 16, 32)
    out = jax.block_until_ready(
        hyperbolic_graph_conv(x, adj, w, b, C_IN, C_OUT, row_tile=128, k_tile=128))
    ref = _hgc_forward_ref(x, adj, w.T, b.reshape(1, -1), C_IN, C_OUT)
    ok &= out.shape == (256, 32)
    ok &= bool(jnp.all(jnp.isfinite(out)))
    ok &= bool(jnp.allclose(out, ref, atol=2e-5, rtol=1e-4))

    assert ok
    print("KERNEL_OK")
</pallas_src>

<mosaic_0001>
module attributes {stable_mosaic.version = 11 : i64} {
  func.func @_linear_logmap_kernel(%arg0: i32, %arg1: memref<8x128xf32, #tpu.memory_space<vmem>>, %arg2: memref<128x128xf32, #tpu.memory_space<vmem>>, %arg3: memref<1x128xf32, #tpu.memory_space<vmem>>, %arg4: memref<8x128xf32, #tpu.memory_space<vmem>>) attributes {dimension_semantics = [#tpu.dimension_semantics<parallel>], iteration_bounds = array<i64: 1>, scalar_prefetch = 0 : i64, scratch_operands = 0 : i64, tpu.core_type = #tpu.core_type<tc>, window_params = [{transform_indices = @transform_0, window_bounds = array<i64: 8, 128>}, {pipeline_mode = #tpu.pipeline_mode<synchronous>, transform_indices = @transform_1, window_bounds = array<i64: 128, 128>}, {pipeline_mode = #tpu.pipeline_mode<synchronous>, transform_indices = @transform_2, window_bounds = array<i64: 1, 128>}, {transform_indices = @transform_3, window_bounds = array<i64: 8, 128>}]} {
    %c0 = arith.constant 0 : index
    %c0_0 = arith.constant 0 : index
    %0 = vector.load %arg1[%c0, %c0_0] : memref<8x128xf32, #tpu.memory_space<vmem>>, vector<8x128xf32>
    %c0_1 = arith.constant 0 : index
    %c0_2 = arith.constant 0 : index
    %1 = vector.load %arg2[%c0_1, %c0_2] : memref<128x128xf32, #tpu.memory_space<vmem>>, vector<128x128xf32>
    %c0_3 = arith.constant 0 : index
    %c0_4 = arith.constant 0 : index
    %2 = vector.load %arg3[%c0_3, %c0_4] : memref<1x128xf32, #tpu.memory_space<vmem>>, vector<1x128xf32>
    %3 = arith.mulf %0, %0 : vector<8x128xf32>
    %cst = arith.constant dense<0.000000e+00> : vector<8xf32>
    %4 = vector.multi_reduction <add>, %3, %cst [1] : vector<8x128xf32> to vector<8xf32>
    %5 = vector.shape_cast %4 : vector<8xf32> to vector<8x1xf32>
    %6 = math.sqrt %5 : vector<8x1xf32>
    %cst_5 = arith.constant 1.000000e-15 : f32
    %7 = vector.broadcast %cst_5 : f32 to vector<8x1xf32>
    %8 = arith.maximumf %6, %7 : vector<8x1xf32>
    %cst_6 = arith.constant dense<0.000000e+00> : vector<8x128xf32>
    %9 = tpu.matmul %0, %1, %cst_6 {dimension_numbers = #tpu.dot_dimension_numbers<[1], [0], [0], [1], [0, 0, 1, 1], [], []>} : vector<8x128xf32>, vector<128x128xf32>, vector<8x128xf32> -> vector<8x128xf32>
    %10 = arith.mulf %9, %9 : vector<8x128xf32>
    %cst_7 = arith.constant dense<0.000000e+00> : vector<8xf32>
    %11 = vector.multi_reduction <add>, %10, %cst_7 [1] : vector<8x128xf32> to vector<8xf32>
    %12 = vector.shape_cast %11 : vector<8xf32> to vector<8x1xf32>
    %13 = math.sqrt %12 : vector<8x1xf32>
    %cst_8 = arith.constant 1.000000e-15 : f32
    %14 = vector.broadcast %cst_8 : f32 to vector<8x1xf32>
    %15 = arith.maximumf %13, %14 : vector<8x1xf32>
    %16 = arith.divf %15, %8 : vector<8x1xf32>
    %cst_9 = arith.constant 1.000000e+00 : f32
    %17 = vector.broadcast %cst_9 : f32 to vector<8x1xf32>
    %18 = arith.mulf %17, %8 : vector<8x1xf32>
    %cst_10 = arith.constant -0.99999988 : f32
    %cst_11 = arith.constant 0.99999988 : f32
    %19 = vector.broadcast %cst_10 : f32 to vector<8x1xf32>
    %20 = arith.maximumf %19, %18 : vector<8x1xf32>
    %21 = vector.broadcast %cst_11 : f32 to vector<8x1xf32>
    %22 = arith.minimumf %21, %20 : vector<8x1xf32>
    %23 = math.log1p %22 : vector<8x1xf32>
    %cst_12 = arith.constant 0.000000e+00 : f32
    %24 = vector.broadcast %cst_12 : f32 to vector<8x1xf32>
    %25 = arith.subf %24, %22 : vector<8x1xf32>
    %26 = math.log1p %25 : vector<8x1xf32>
    %27 = arith.subf %23, %26 : vector<8x1xf32>
    %cst_13 = arith.constant 5.000000e-01 : f32
    %28 = vector.broadcast %cst_13 : f32 to vector<8x1xf32>
    %29 = arith.mulf %28, %27 : vector<8x1xf32>
    %30 = arith.mulf %16, %29 : vector<8x1xf32>
    %31 = math.tanh %30 : vector<8x1xf32>
    %32 = vector.broadcast %31 : vector<8x1xf32> to vector<8x128xf32>
    %33 = arith.mulf %32, %9 : vector<8x128xf32>
    %cst_14 = arith.constant 1.000000e+00 : f32
    %34 = vector.broadcast %cst_14 : f32 to vector<8x1xf32>
    %35 = arith.mulf %15, %34 : vector<8x1xf32>
    %36 = vector.broadcast %35 : vector<8x1xf32> to vector<8x128xf32>
    %37 = arith.divf %33, %36 : vector<8x128xf32>
    %cst_15 = arith.constant 0.000000e+00 : f32
    %38 = vector.broadcast %cst_15 : f32 to vector<8x1xf32>
    %39 = arith.cmpf oeq, %12, %38 : vector<8x1xf32>
    %cst_16 = arith.constant 0.000000e+00 : f32
    %40 = vector.shape_cast %39 : vector<8x1xi1> to vector<8x1xi1>
    %41 = vector.broadcast %40 : vector<8x1xi1> to vector<8x128xi1>
    %42 = vector.broadcast %cst_16 : f32 to vector<8x128xf32>
    %43 = arith.select %41, %42, %37 : vector<8x128xi1>, vector<8x128xf32>
    %cst_17 = arith.constant 1.000000e+00 : f32
    %44 = vector.broadcast %cst_17 : f32 to vector<8x1xf32>
    %45 = arith.divf %31, %44 : vector<8x1xf32>
    %cst_18 = arith.constant 0.000000e+00 : f32
    %46 = vector.broadcast %cst_18 : f32 to vector<8x1xf32>
    %47 = arith.select %39, %46, %45 : vector<8x1xi1>, vector<8x1xf32>
    %cst_19 = arith.constant 0.995999991 : f32
    %48 = vector.broadcast %cst_19 : f32 to vector<8x1xf32>
    %49 = arith.cmpf ogt, %47, %48 : vector<8x1xf32>
    %cst_20 = arith.constant 1.000000e-15 : f32
    %50 = vector.broadcast %cst_20 : f32 to vector<8x1xf32>
    %51 = arith.maximumf %47, %50 : vector<8x1xf32>
    %cst_21 = arith.constant 0.995999991 : f32
    %52 = vector.broadcast %cst_21 : f32 to vector<8x1xf32>
    %53 = arith.divf %52, %51 : vector<8x1xf32>
    %54 = vector.broadcast %53 : vector<8x1xf32> to vector<8x128xf32>
    %55 = arith.mulf %43, %54 : vector<8x128xf32>
    %56 = vector.shape_cast %49 : vector<8x1xi1> to vector<8x1xi1>
    %57 = vector.broadcast %56 : vector<8x1xi1> to vector<8x128xi1>
    %58 = arith.select %57, %55, %43 : vector<8x128xi1>, vector<8x128xf32>
    %cst_22 = arith.constant 0.995999991 : f32
    %59 = vector.broadcast %cst_22 : f32 to vector<8x1xf32>
    %60 = arith.select %49, %59, %47 : vector<8x1xi1>, vector<8x1xf32>
    %61 = arith.mulf %60, %60 : vector<8x1xf32>
    %62 = arith.mulf %2, %2 : vector<1x128xf32>
    %cst_23 = arith.constant dense<0.000000e+00> : vector<1xf32>
    %63 = vector.multi_reduction <add>, %62, %cst_23 [1] : vector<1x128xf32> to vector<1xf32>
    %64 = vector.shape_cast %63 : vector<1xf32> to vector<1x1xf32>
    %65 = vector.broadcast %2 : vector<1x128xf32> to vector<8x128xf32>
    %66 = arith.mulf %58, %65 : vector<8x128xf32>
    %cst_24 = arith.constant dense<0.000000e+00> : vector<8xf32>
    %67 = vector.multi_reduction <add>, %66, %cst_24 [1] : vector<8x128xf32> to vector<8xf32>
    %68 = vector.shape_cast %67 : vector<8xf32> to vector<8x1xf32>
    %cst_25 = arith.constant 2.000000e+00 : f32
    %69 = vector.broadcast %cst_25 : f32 to vector<8x1xf32>
    %70 = arith.mulf %69, %68 : vector<8x1xf32>
    %cst_26 = arith.constant 1.000000e+00 : f32
    %71 = vector.broadcast %cst_26 : f32 to vector<8x1xf32>
    %72 = arith.addf %71, %70 : vector<8x1xf32>
    %cst_27 = arith.constant 1.000000e+00 : f32
    %73 = vector.broadcast %cst_27 : f32 to vector<1x1xf32>
    %74 = arith.mulf %73, %64 : vector<1x1xf32>
    %75 = vector.broadcast %74 : vector<1x1xf32> to vector<8x1xf32>
    %76 = arith.addf %72, %75 : vector<8x1xf32>
    %77 = vector.broadcast %76 : vector<8x1xf32> to vector<8x128xf32>
    %78 = arith.mulf %77, %58 : vector<8x128xf32>
    %cst_28 = arith.constant 1.000000e+00 : f32
    %79 = vector.broadcast %cst_28 : f32 to vector<8x1xf32>
    %80 = arith.mulf %79, %61 : vector<8x1xf32>
    %cst_29 = arith.constant 1.000000e+00 : f32
    %81 = vector.broadcast %cst_29 : f32 to vector<8x1xf32>
    %82 = arith.subf %81, %80 : vector<8x1xf32>
    %83 = vector.broadcast %82 : vector<8x1xf32> to vector<8x128xf32>
    %84 = vector.broadcast %2 : vector<1x128xf32> to vector<8x128xf32>
    %85 = arith.mulf %83, %84 : vector<8x128xf32>
    %86 = arith.addf %78, %85 : vector<8x128xf32>
    %cst_30 = arith.constant 1.000000e+00 : f32
    %87 = vector.broadcast %cst_30 : f32 to vector<8x1xf32>
    %88 = arith.mulf %87, %61 : vector<8x1xf32>
    %89 = vector.broadcast %64 : vector<1x1xf32> to vector<8x1xf32>
    %90 = arith.mulf %88, %89 : vector<8x1xf32>
    %91 = arith.addf %72, %90 : vector<8x1xf32>
    %cst_31 = arith.constant 1.000000e-15 : f32
    %92 = vector.broadcast %cst_31 : f32 to vector<8x1xf32>
    %93 = arith.maximumf %91, %92 : vector<8x1xf32>
    %94 = vector.broadcast %93 : vector<8x1xf32> to vector<8x128xf32>
    %95 = arith.divf %86, %94 : vector<8x128xf32>
    %96 = arith.mulf %95, %95 : vector<8x128xf32>
    %cst_32 = arith.constant dense<0.000000e+00> : vector<8xf32>
    %97 = vector.multi_reduction <add>, %96, %cst_32 [1] : vector<8x128xf32> to vector<8xf32>
    %98 = vector.shape_cast %97 : vector<8xf32> to vector<8x1xf32>
    %99 = math.sqrt %98 : vector<8x1xf32>
    %cst_33 = arith.constant 1.000000e-15 : f32
    %100 = vector.broadcast %cst_33 : f32 to vector<8x1xf32>
    %101 = arith.maximumf %99, %100 : vector<8x1xf32>
    %cst_34 = arith.constant 0.995999991 : f32
    %102 = vector.broadcast %cst_34 : f32 to vector<8x1xf32>
    %103 = arith.cmpf ogt, %101, %102 : vector<8x1xf32>
    %cst_35 = arith.constant 0.995999991 : f32
    %104 = vector.broadcast %cst_35 : f32 to vector<8x1xf32>
    %105 = arith.divf %104, %101 : vector<8x1xf32>
    %106 = vector.broadcast %105 : vector<8x1xf32> to vector<8x128xf32>
    %107 = arith.mulf %95, %106 : vector<8x128xf32>
    %108 = vector.shape_cast %103 : vector<8x1xi1> to vector<8x1xi1>
    %109 = vector.broadcast %108 : vector<8x1xi1> to vector<8x128xi1>
    %110 = arith.select %109, %107, %95 : vector<8x128xi1>, vector<8x128xf32>
    %cst_36 = arith.constant 0.995999991 : f32
    %111 = vector.broadcast %cst_36 : f32 to vector<8x1xf32>
    %112 = arith.minimumf %101, %111 : vector<8x1xf32>
    %cst_37 = arith.constant 1.000000e+00 : f32
    %113 = vector.broadcast %cst_37 : f32 to vector<8x1xf32>
    %114 = arith.mulf %113, %112 : vector<8x1xf32>
    %cst_38 = arith.constant -0.99999988 : f32
    %cst_39 = arith.constant 0.99999988 : f32
    %115 = vector.broadcast %cst_38 : f32 to vector<8x1xf32>
    %116 = arith.maximumf %115, %114 : vector<8x1xf32>
    %117 = vector.broadcast %cst_39 : f32 to vector<8x1xf32>
    %118 = arith.minimumf %117, %116 : vector<8x1xf32>
    %119 = math.log1p %118 : vector<8x1xf32>
    %cst_40 = arith.constant 0.000000e+00 : f32
    %120 = vector.broadcast %cst_40 : f32 to vector<8x1xf32>
    %121 = arith.subf %120, %118 : vector<8x1xf32>
    %122 = math.log1p %121 : vector<8x1xf32>
    %123 = arith.subf %119, %122 : vector<8x1xf32>
    %cst_41 = arith.constant 5.000000e-01 : f32
    %124 = vector.broadcast %cst_41 : f32 to vector<8x1xf32>
    %125 = arith.mulf %124, %123 : vector<8x1xf32>
    %cst_42 = arith.constant 1.000000e+00 : f32
    %126 = vector.broadcast %cst_42 : f32 to vector<8x1xf32>
    %127 = arith.mulf %126, %112 : vector<8x1xf32>
    %128 = arith.divf %125, %127 : vector<8x1xf32>
    %129 = vector.broadcast %128 : vector<8x1xf32> to vector<8x128xf32>
    %130 = arith.mulf %129, %110 : vector<8x128xf32>
    %c0_43 = arith.constant 0 : index
    %c0_44 = arith.constant 0 : index
    %131 = vector.load %arg4[%c0_43, %c0_44] : memref<8x128xf32, #tpu.memory_space<vmem>>, vector<8x128xf32>
    tpu.vector_store %arg4[%c0_43, %c0_44], %130 {strides = array<i32>} : memref<8x128xf32, #tpu.memory_space<vmem>>, vector<8x128xf32>,
    return
  }
  func.func @transform_0(%arg0: i32) -> (i32, i32) {
    %c0_i32 = arith.constant 0 : i32
    %c0_i32_0 = arith.constant 0 : i32
    return %arg0, %c0_i32 : i32, i32
  }
  func.func @transform_1(%arg0: i32) -> (i32, i32) {
    %c0_i32 = arith.constant 0 : i32
    %c0_i32_0 = arith.constant 0 : i32
    %c0_i32_1 = arith.constant 0 : i32
    return %c0_i32, %c0_i32_0 : i32, i32
  }
  func.func @transform_2(%arg0: i32) -> (i32, i32) {
    %c0_i32 = arith.constant 0 : i32
    %c0_i32_0 = arith.constant 0 : i32
    %c0_i32_1 = arith.constant 0 : i32
    return %c0_i32, %c0_i32_0 : i32, i32
  }
  func.func @transform_3(%arg0: i32) -> (i32, i32) {
    %c0_i32 = arith.constant 0 : i32
    %c0_i32_0 = arith.constant 0 : i32
    return %arg0, %c0_i32 : i32, i32
  }
}

</mosaic_0001>

<bundles_post_ra>
// kernel: tpu_custom_call.1
= control target key start
LH: loop header
LB: loop body
LE: loop exit
PB: predicated region body
PF: predicated region fallthrough
CT: control target
= control target key end

     0   :  { %8 = vsyncpa [#allocation3], 0  ;;  %s497_s0 = inlined_call_operand.hbm [shape: f32[8,128], index: 0, kind: input, shape index: {}]   ;;  %s498_s1 = inlined_call_operand.hbm [shape: f32[128,128], index: 1, kind: input, shape index: {}]   ;;  %s499_s2 = inlined_call_operand.vmem [shape: f32[1,128], index: 2, kind: input, shape index: {}]   ;;  %s500_s3 = inlined_call_operand.hbm [shape: f32[8,128], index: 3, kind: output, shape index: {}]  }
   0x1   :  { %9 = vsyncpa [#allocation6], 0 }
   0x2   :  { %10 = vsyncpa [#allocation4], 0  ;;  %s443_s12 = smov [#allocation2]   ;;  %s444_s14 = smov [#allocation5]  }
   0x3   :  { %s17_s13 = sshll.u32 %s443_s12, 4  ;;  %s26_s15 = sshll.u32 %s444_s14, 4  ;;  %s18_s13 = int_to_ptr.vmem [resolvable:$true] %s17_s13  ;;  %s27_s15 = int_to_ptr.vmem [resolvable:$true] %s26_s15 }
   0x4   :  { %s385_s16 = scalar_lea.vmem %s18_s13, 128  ;;  %p390_p1 = scmp.lt.s32.totalorder %s18_s13, %s18_s13 }
   0x5   :  { %p386_p0 = scmp.ne.s32.totalorder %s18_s13, %s385_s16  ;;  %p391_p2 = scmp.lt.s32.totalorder %s385_s16, %s385_s16 }
   0x7   :  { %p392_p3 = por %p391_p2, %p390_p1 }
   0x9   :  { %p393_p4 = pnand %p392_p3, %p386_p0 }
   0xb   :  { %396 = shalt.err (!%p393_p4)
}
   0xc   :  { %20 = dma.hbm_to_vmem [thread:$0]  %s497_s0, 128, %s18_s13, [#allocation3]  }
   0xd   :  { %s405_s19 = scalar_lea.vmem %s27_s15, 2048  ;;  %p410_p6 = scmp.lt.s32.totalorder %s27_s15, %s27_s15 }
   0xe   :  { %p406_p5 = scmp.ne.s32.totalorder %s27_s15, %s405_s19  ;;  %p411_p7 = scmp.lt.s32.totalorder %s405_s19, %s405_s19 }
  0x10   :  { %p412_p8 = por %p411_p7, %p410_p6 }
  0x12   :  { %p413_p9 = pnand %p412_p8, %p406_p5 }
  0x14   :  { %416 = shalt.err (!%p413_p9)
}
  0x15   :  { %s445_s20 = smov 128   ;;  %s446_s21 = smov 8  }
  0x16   :  { %32 = dma.hbm_to_vmem [thread:$0]  %s498_s1, 2048, %s27_s15, [#allocation6], %s445_s20, %s445_s20, %s446_s21  }
  0x17   :  { %437 = dma.done.wait [#allocation3], 128  }
  0x18   :  { %438 = vsyncadd [#allocation3], 4294967168 }
  0x19   :  { %439 = dma.done.wait [#allocation6], 2048  }
  0x1a   :  { %440 = vsyncadd [#allocation6], 4294965248  ;;  %v447_v0 = vmov 0.0   ;;  %vm448_vm0 = vmmov 0   ;;  %v57_v1 = vld [vmem:[#allocation5 + $0x78] sm:$0xff]  ;;  %v56_v2 = vld [vmem:[#allocation5 + $0x70] sm:$0xff]  ;;  %v202_v62 = vlaneseq }
  0x1b   :  { %307 = vmatprep.subr.mxu0 %v447_v0  ;;  %339 = vmatprep.mubr.msk.f32.mxu0 %vm448_vm0, %v447_v0  ;;  %v55_v3 = vld [vmem:[#allocation5 + $0x68] sm:$0xff]  ;;  %v54_v4 = vld [vmem:[#allocation5 + $0x60] sm:$0xff]  ;;  %v41_v5 = vld [vmem:[#allocation2] sm:$0xff]  ;;  %vm197_vm1 = vcmask 1040384  }
  0x1c   :  { %308 = vmatpush3.msra.mxu0 %v57_v1  ;;  %v53_v6 = vld [vmem:[#allocation5 + $0x58] sm:$0xff]  ;;  %v59_v7 = vmul.f32 %v41_v5, %v41_v5  ;;  %v52_v8 = vld [vmem:[#allocation5 + $0x50] sm:$0xff]  ;;  %v51_v9 = vld [vmem:[#allocation5 + $0x48] sm:$0xff]  ;;  %v203_v63 = vshrl.u32 %v202_v62, 7 }
  0x1d   :  { %309 = vmatprep.subr.mxu0 %v447_v0  ;;  %v50_v10 = vld [vmem:[#allocation5 + $0x40] sm:$0xff]  ;;  %v49_v11 = vld [vmem:[#allocation5 + $0x38] sm:$0xff]  ;;  %v48_v12 = vld [vmem:[#allocation5 + $0x30] sm:$0xff] }
  0x1e   :  { %310 = vmatpush3.msra.mxu0 %v56_v2  ;;  %60 = vadd.xlane.f32.xlu0 %v59_v7  ;;  %v47_v13 = vld [vmem:[#allocation5 + $0x28] sm:$0xff]  ;;  %v46_v14 = vld [vmem:[#allocation5 + $0x20] sm:$0xff]  ;;  %v45_v15 = vld [vmem:[#allocation5 + $0x18] sm:$0xff] }
  0x1f   :  { %311 = vmatprep.subr.mxu0 %v447_v0  ;;  %v44_v16 = vld [vmem:[#allocation5 + $0x10] sm:$0xff]  ;;  %v43_v17 = vld [vmem:[#allocation5 + $0x8] sm:$0xff]  ;;  %v42_v18 = vld [vmem:[#allocation5] sm:$0xff] }
  0x20   :  { %312 = vmatpush3.msra.mxu0 %v55_v3  ;;  %v479_v19 = vld [vmem:[%s499_s2] sm:$0x1]  ;;  %s449_s2 = smov [#allocation7]  }
  0x21   :  { %313 = vmatprep.subr.mxu0 %v447_v0  ;;  %v196_v20 = vmul.f32 %v479_v19, %v479_v19  ;;  %s278_s24 = sshll.u32 %s449_s2, 4  ;;  %s279_s24 = int_to_ptr.vmem [resolvable:$true] %s278_s24 }
  0x22   :  { %314 = vmatpush3.msra.mxu0 %v54_v4  ;;  %s417_s25 = scalar_lea.vmem %s279_s24, 128  ;;  %p422_p11 = scmp.lt.s32.totalorder %s279_s24, %s279_s24 }
  0x23   :  { %315 = vmatprep.subr.mxu0 %v447_v0  ;;  %v198_v21 = vsel %vm197_vm1, %v196_v20, 0.0  ;;  %p418_p10 = scmp.ne.s32.totalorder %s279_s24, %s417_s25  ;;  %p423_p12 = scmp.lt.s32.totalorder %s417_s25, %s417_s25 }
  0x24   :  { %316 = vmatpush3.msra.mxu0 %v53_v6  ;;  %199 = vadd.xlane.f32.xlu1 %v198_v21 }
  0x25   :  { %317 = vmatprep.subr.mxu0 %v447_v0  ;;  %p424_p13 = por %p423_p12, %p422_p11 }
  0x26   :  { %318 = vmatpush3.msra.mxu0 %v52_v8 }
  0x27   :  { %319 = vmatprep.subr.mxu0 %v447_v0  ;;  %p425_p0 = pnand %p424_p13, %p418_p10 }
  0x28   :  { %320 = vmatpush3.msra.mxu0 %v51_v9 }
  0x29   :  { %321 = vmatprep.subr.mxu0 %v447_v0 }
  0x2a   :  { %322 = vmatpush3.msra.mxu0 %v50_v10 }
  0x2b   :  { %323 = vmatprep.subr.mxu0 %v447_v0 }
  0x2c   :  { %324 = vmatpush3.msra.mxu0 %v49_v11 }
  0x2d   :  { %325 = vmatprep.subr.mxu0 %v447_v0 }
  0x2e   :  { %326 = vmatpush3.msra.mxu0 %v48_v12 }
  0x2f   :  { %327 = vmatprep.subr.mxu0 %v447_v0 }
  0x30   :  { %328 = vmatpush3.msra.mxu0 %v47_v13 }
  0x31   :  { %329 = vmatprep.subr.mxu0 %v447_v0 }
  0x32   :  { %330 = vmatpush3.msra.mxu0 %v46_v14 }
  0x33   :  { %331 = vmatprep.subr.mxu0 %v447_v0 }
  0x34   :  { %332 = vmatpush3.msra.mxu0 %v45_v15 }
  0x35   :  { %333 = vmatprep.subr.mxu0 %v447_v0 }
  0x36   :  { %334 = vmatpush3.msra.mxu0 %v44_v16 }
  0x37   :  { %335 = vmatprep.subr.mxu0 %v447_v0 }
  0x38   :  { %336 = vmatpush3.msra.mxu0 %v43_v17 }
  0x39   :  { %337 = vmatprep.subr.mxu0 %v447_v0  ;;  %v204_v0 = vsub.s32 0, %v203_v63 }
  0x3a   :  { %338 = vmatpush3.msra.mxu0 %v42_v18 }
  0x3b   :  { %340 = vmatmul.mubr.f32.vlgmr.msra.gmra.mxu0 %v41_v5  ;;  %v205_v8 = vrot.slane %v479_v19, %v204_v0 }
  0xa7   :  { %v61_v25 = vpop.xlane.xlu0 %60 }
  0xa8   :  { %349 = vrsqrt.f32 %v61_v25  ;;  %vm64_vm2 = vcmp.eq.f32.partialorder %v61_v25, inf  ;;  %v67_v28 = vand.u32 2147483648, %v61_v25  ;;  %vm66_vm3 = vcmp.eq.f32.partialorder %v61_v25, 0.0 }
  0xad   :  { %v200_v1 = vpop.xlane.xlu1 %199 }
  0xae   :  { %v215_v5 = vrot.slane %v200_v1, %v204_v0 }
  0xb5   :  { %v350_v26 = vpop.eup %349 }
  0xb6   :  { %v63_v27 = vmul.f32 %v350_v26, %v61_v25 }
  0xb8   :  { %v65_v29 = vsel %vm64_vm2, %v61_v25, %v63_v27 }
  0xb9   :  { %v68_v30 = vsel %vm66_vm3, %v67_v28, %v65_v29 }
  0xba   :  { %v69_v31 = vmax.f32 %v68_v30, 1e-15 }
  0xbc   :  { %v288_v32 = vclamps-f32 %v69_v31, 0.9999999 }
  0xbe   :  { %v164_v33 = vsub.f32 0.0, %v288_v32  ;;  %v155_v34 = vadd.f32 1.0, %v288_v32  ;;  %v158_v37 = vmul.f32 -0.5, %v288_v32  ;;  %v161_v43 = vand.u32 2147483647, %v288_v32 }
  0xc0   :  { %v165_v35 = vadd.f32 1.0, %v164_v33  ;;  %351 = vlog2.f32 %v155_v34  ;;  %v168_v38 = vmul.f32 -0.5, %v164_v33  ;;  %v159_v40 = vadd.f32 1.0, %v158_v37 }
  0xc1   :  { %v171_v44 = vand.u32 2147483647, %v164_v33  ;;  %vm162_vm4 = vcmp.lt.f32.partialorder %v161_v43, 0.0004427343 }
  0xc2   :  { %353 = vlog2.f32 %v165_v35  ;;  %v169_v41 = vadd.f32 1.0, %v168_v38  ;;  %v160_v46 = vmul.f32 %v288_v32, %v159_v40 }
  0xc3   :  { %vm172_vm5 = vcmp.lt.f32.partialorder %v171_v44, 0.0004427343 }
  0xc4   :  { %v170_v48 = vmul.f32 %v169_v41, %v164_v33 }
  0xcd   :  { %v352_v39 = vpop.eup %351 }
  0xce   :  { %v157_v45 = vmul.f32 0.6931472, %v352_v39 }
  0xcf   :  { %v354_v42 = vpop.eup %353 }
  0xd0   :  { %v167_v47 = vmul.f32 0.6931472, %v354_v42  ;;  %v163_v50 = vsel %vm162_vm4, %v160_v46, %v157_v45 }
  0xd2   :  { %v173_v51 = vsel %vm172_vm5, %v170_v48, %v167_v47 }
  0xd3   :  { %v174_v55 = vsub.f32 %v163_v50, %v173_v51 }
  0xd5   :  { %v175_v60 = vmul.f32 0.5, %v174_v55 }
  0xfb   :  { %v483_v22 = vpop.f32.mrf.mxu0 }
  0xfc   :  { %v140_v23 = vmul.f32 %v483_v22, %v483_v22 }
  0xfd   :  { %v341_v24 = vpop.f32.mrf.mxu0 }
  0xfe   :  { %141 = vadd.xlane.f32.xlu0 %v140_v23 }
 0x187   :  { %v142_v36 = vpop.xlane.xlu0 %141 }
 0x188   :  { %355 = vrsqrt.f32 %v142_v36  ;;  %vm145_vm6 = vcmp.eq.f32.partialorder %v142_v36, inf  ;;  %v148_v53 = vand.u32 2147483648, %v142_v36  ;;  %vm147_vm7 = vcmp.eq.f32.partialorder %v142_v36, 0.0 }
 0x189   :  { %357 = vrcp.f32 %v69_v31 }
 0x195   :  { %v356_v49 = vpop.eup %355 }
 0x196   :  { %v144_v52 = vmul.f32 %v356_v49, %v142_v36  ;;  %v358_v58 = vpop.eup %357 }
 0x198   :  { %v146_v54 = vsel %vm145_vm6, %v142_v36, %v144_v52 }
 0x199   :  { %v149_v56 = vsel %vm147_vm7, %v148_v53, %v146_v54 }
 0x19a   :  { %v150_v57 = vmax.f32 %v149_v56, 1e-15 }
 0x19c   :  { %v152_v59 = vmul.f32 %v358_v58, %v150_v57 }
 0x19e   :  { %v176_v61 = vmul.f32 %v175_v60, %v152_v59 }
 0x1a0   :  { %359 = vtanh.f32 %v176_v61 }
 0x1a1   :  { %361 = vrcp.f32 %v150_v57 }
 0x1ad   :  { %v360_v2 = vpop.eup %359 }
 0x1ae   :  { %v185_v3 = vsel %vm147_vm7, 0.0, %v360_v2  ;;  %v178_v12 = vmul.f32 %v360_v2, %v483_v22  ;;  %v362_v13 = vpop.eup %361 }
 0x1af   :  { %vm186_vm8 = vcmp.gt.f32.partialorder %v185_v3, 0.996  ;;  %v187_v4 = vmax.f32 %v185_v3, 1e-15 }
 0x1b0   :  { %v194_v6 = vsel %vm186_vm8, 0.996, %v185_v3  ;;  %v180_v14 = vmul.f32 %v362_v13, %v178_v12 }
 0x1b1   :  { %363 = vrcp.f32 %v187_v4  ;;  %v195_v7 = vmul.f32 %v194_v6, %v194_v6 }
 0x1b2   :  { %v184_v17 = vsel %vm147_vm7, 0.0, %v180_v14 }
 0x1b3   :  { %v218_v9 = vsub.f32 1.0, %v195_v7  ;;  %v221_v10 = vmul.f32 %v215_v5, %v195_v7 }
 0x1b5   :  { %v219_v11 = vmul.f32 %v218_v9, %v205_v8 }
 0x1be   :  { %v364_v15 = vpop.eup %363 }
 0x1bf   :  { %v189_v16 = vmul.f32 0.996, %v364_v15 }
 0x1c1   :  { %v190_v18 = vmul.f32 %v189_v16, %v184_v17 }
 0x1c3   :  { %v193_v20 = vsel %vm186_vm8, %v190_v18, %v184_v17 }
 0x1c4   :  { %v207_v21 = vmul.f32 %v205_v8, %v193_v20 }
 0x1c6   :  { %208 = vadd.xlane.f32.xlu1 %v207_v21 }
 0x24f   :  { %v209_v23 = vpop.xlane.xlu1 %208 }
 0x250   :  { %v210_v24 = vmul.f32 2.0, %v209_v23 }
 0x252   :  { %v211_v25 = vadd.f32 1.0, %v210_v24 }
 0x254   :  { %v216_v19 = vadd.f32 %v215_v5, %v211_v25  ;;  %v222_v26 = vadd.f32 %v221_v10, %v211_v25 }
 0x256   :  { %v217_v27 = vmul.f32 %v216_v19, %v193_v20  ;;  %v223_v28 = vmax.f32 %v222_v26, 1e-15 }
 0x258   :  { %v220_v29 = vadd.f32 %v219_v11, %v217_v27  ;;  %365 = vrcp.f32 %v223_v28 }
 0x265   :  { %v366_v22 = vpop.eup %365 }
 0x266   :  { %v225_v30 = vmul.f32 %v366_v22, %v220_v29 }
 0x268   :  { %v226_v31 = vmul.f32 %v225_v30, %v225_v30 }
 0x26a   :  { %227 = vadd.xlane.f32.xlu0 %v226_v31 }
 0x2f3   :  { %v228_v32 = vpop.xlane.xlu0 %227 }
 0x2f4   :  { %367 = vrsqrt.f32 %v228_v32  ;;  %vm231_vm9 = vcmp.eq.f32.partialorder %v228_v32, inf  ;;  %v234_v35 = vand.u32 2147483648, %v228_v32  ;;  %vm233_vm10 = vcmp.eq.f32.partialorder %v228_v32, 0.0 }
 0x301   :  { %v368_v33 = vpop.eup %367 }
 0x302   :  { %v230_v34 = vmul.f32 %v368_v33, %v228_v32 }
 0x304   :  { %v232_v36 = vsel %vm231_vm9, %v228_v32, %v230_v34 }
 0x305   :  { %v235_v37 = vsel %vm233_vm10, %v234_v35, %v232_v36 }
 0x306   :  { %v236_v38 = vmax.f32 %v235_v37, 1e-15 }
 0x308   :  { %v244_v39 = vmin.f32 %v236_v38, 0.996  ;;  %369 = vrcp.f32 %v236_v38  ;;  %vm237_vm13 = vcmp.gt.f32.partialorder %v236_v38, 0.996 }
 0x30a   :  { %v247_v40 = vadd.f32 1.0, %v244_v39  ;;  %v256_v41 = vsub.f32 0.0, %v244_v39  ;;  %v250_v43 = vmul.f32 -0.5, %v244_v39  ;;  %v253_v49 = vand.u32 2147483647, %v244_v39 }
 0x30c   :  { %371 = vlog2.f32 %v247_v40  ;;  %v257_v42 = vadd.f32 1.0, %v256_v41  ;;  %v260_v44 = vmul.f32 -0.5, %v256_v41  ;;  %v251_v46 = vadd.f32 1.0, %v250_v43 }
 0x30d   :  { %v263_v50 = vand.u32 2147483647, %v256_v41  ;;  %vm254_vm11 = vcmp.lt.f32.partialorder %v253_v49, 0.0004427343 }
 0x30e   :  { %373 = vlog2.f32 %v257_v42  ;;  %v261_v47 = vadd.f32 1.0, %v260_v44  ;;  %v252_v54 = vmul.f32 %v251_v46, %v244_v39 }
 0x30f   :  { %375 = vrcp.f32 %v244_v39  ;;  %vm264_vm12 = vcmp.lt.f32.partialorder %v263_v50, 0.0004427343 }
 0x310   :  { %v262_v56 = vmul.f32 %v261_v47, %v256_v41 }
 0x315   :  { %v370_v45 = vpop.eup %369 }
 0x316   :  { %v239_v53 = vmul.f32 0.996, %v370_v45 }
 0x318   :  { %v240_v60 = vmul.f32 %v239_v53, %v225_v30 }
 0x319   :  { %v372_v48 = vpop.eup %371 }
 0x31a   :  { %v249_v51 = vmul.f32 0.6931472, %v372_v48  ;;  %v243_v0 = vsel %vm237_vm13, %v240_v60, %v225_v30 }
 0x31b   :  { %v374_v52 = vpop.eup %373 }
 0x31c   :  { %v259_v55 = vmul.f32 0.6931472, %v374_v52  ;;  %v255_v57 = vsel %vm254_vm11, %v252_v54, %v249_v51  ;;  %v376_v62 = vpop.eup %375 }
 0x31e   :  { %v265_v58 = vsel %vm264_vm12, %v262_v56, %v259_v55 }
 0x31f   :  { %v266_v59 = vsub.f32 %v255_v57, %v265_v58 }
 0x321   :  { %v267_v61 = vmul.f32 0.5, %v266_v59 }
 0x323   :  { %v269_v63 = vmul.f32 %v376_v62, %v267_v61 }
 0x325   :  { %v270_v1 = vmul.f32 %v269_v63, %v243_v0 }
 0x327   :  { %271 = vst [vmem:[#allocation7] sm:$0xff] %v270_v1 }
 0x328   :  { %428 = shalt.err (!%p425_p0)
}
 0x329   :  { %281 = dma.vmem_to_hbm [thread:$0]  %s279_s24, 128, %s500_s3, [#allocation4]  }
 0x32a   :  { %441 = dma.done.wait [#allocation4], 128  }
 0x32b   :  { %442 = vsyncadd [#allocation4], 4294967168 }
 0x32c   :  { %285 = vsyncpa [#allocation3], 1 }
 0x32d   :  { %286 = vsyncpa [#allocation6], 1 }
 0x32e   :  { %287 = vsyncpa [#allocation4], 1 }

</bundles_post_ra>
